<compile_context>
chip_gen: v5e
topology: v5e:2x2
jax: 0.10.0
libtpu: 0.0.40
codegen_flags: <defaults>
</compile_context>

<pallas_src>
import functools

import jax
import jax.numpy as jnp
from jax.experimental import pallas as pl
from jax.experimental.pallas import tpu as pltpu

HIGHEST = jax.lax.Precision.HIGHEST
EPS = 1e-5
LANE = 128


# ----------------------------------------------------------------------------
# Pallas kernel: one grid step per batch element, whole (tiny) problem resident
# in VMEM. Seven small MXU matmuls, all bf16 x bf16 -> f32, no concatenates.
# ----------------------------------------------------------------------------
def down_kernel(x_ref, wf_ref, t1_ref, op3_ref, cid_ref, clap_ref, cew_ref, cns_ref,
                t2_ref, w3_ref, t3_ref, tsc_ref, o_ref, *, neck, vpad):
    bf16 = jnp.bfloat16
    x = x_ref[...]                                                     # (Cin, Vin_pad) bf16

    # fused: conv1 (seq1) + 1x1 shortcut conv (seq2); BN scales pre-folded into wf
    ya = jnp.dot(wf_ref[...], x, preferred_element_type=jnp.float32)  # (neck+out, Vin_pad) f32
    y = jnp.maximum(ya[:neck] + t1_ref[...], 0.0)                     # (neck, Vin_pad)
    sc = ya[neck:, :vpad] + tsc_ref[...]                              # (out, vpad); cols>=nv_out dead

    # MeshConv stride-2: Laplacian / EW-grad / NS-grad taps (F2V folded in) -> one matmul
    # with a 128-aligned contraction dim and lane-dense 3x128 output blocks.
    y_bf = y.astype(bf16)
    h = jnp.dot(y_bf, op3_ref[...], preferred_element_type=jnp.float32)   # (neck, 3*vpad)
    h_bf = h.astype(bf16)

    # per-tap coefficient combine (BN2 scale folded): 4 accumulating matmuls on
    # 128-aligned lane slices — no sublane concat / feats materialization.
    mesh = jnp.dot(cid_ref[...], y_bf[:, :vpad], preferred_element_type=jnp.float32)
    mesh = mesh + jnp.dot(clap_ref[...], h_bf[:, 0 * vpad:1 * vpad],
                          preferred_element_type=jnp.float32)
    mesh = mesh + jnp.dot(cew_ref[...], h_bf[:, 1 * vpad:2 * vpad],
                          preferred_element_type=jnp.float32)
    mesh = mesh + jnp.dot(cns_ref[...], h_bf[:, 2 * vpad:3 * vpad],
                          preferred_element_type=jnp.float32)
    z = jnp.maximum(mesh + t2_ref[...], 0.0)                          # (neck, vpad)

    # conv3 (BN3 scale folded) + residual add + final ReLU
    out = jnp.dot(w3_ref[...], z.astype(bf16),
                  preferred_element_type=jnp.float32) + t3_ref[...]   # (out, vpad)
    o_ref[...] = jnp.maximum(out + sc, 0.0)


def down_pallas(x, kargs, *, out_ch, nv_out):
    B, cin, vin = x.shape
    vpad = kargs['vpad']
    vin_pad = kargs['vin_pad']
    neck = kargs['t1'].shape[0]

    # zero-pad Vin to a lane multiple (padded op3 rows are zero, so padding is inert)
    x_pad = jnp.pad(x, ((0, 0), (0, 0), (0, vin_pad - vin))).astype(jnp.bfloat16)

    order = ['wf', 't1', 'op3', 'cid', 'clap', 'cew', 'cns', 't2', 'w3', 't3', 'tsc']
    params = [kargs[k] for k in order]

    kernel = functools.partial(down_kernel, neck=neck, vpad=vpad)
    out = pl.pallas_call(
        kernel,
        out_shape=jax.ShapeDtypeStruct((B, out_ch, vpad), jnp.float32),
        grid=(B,),
        in_specs=[pl.BlockSpec((None, cin, vin_pad), lambda b: (b, 0, 0))]
        + [pl.BlockSpec(p.shape, lambda b: (0, 0)) for p in params],  # shared weights/biases
        out_specs=pl.BlockSpec((None, out_ch, vpad), lambda b: (b, 0, 0)),
        compiler_params=pltpu.CompilerParams(dimension_semantics=("parallel",)),
    )(x_pad, *params)
    return out[:, :, :nv_out]


# ----------------------------------------------------------------------------
# Deterministic synthetic parameters (module __init__ shapes).
# ----------------------------------------------------------------------------
def init_params(key, in_ch, out_ch, level):
    neck = in_ch
    nv_in = 10 * 4 ** (level + 1) + 2      # vertices of the finer (input) icosphere mesh
    nv_out = 10 * 4 ** level + 2           # vertices kept after 'drop' downsample
    nf = 20 * 4 ** (level + 1)             # faces of the finer mesh

    keys = iter(jax.random.split(key, 40))

    def nrm(shape, scale=1.0):
        return scale * jax.random.normal(next(keys), shape, dtype=jnp.float32)

    def uni(shape, lo, hi):
        return jax.random.uniform(next(keys), shape, jnp.float32, lo, hi)

    def bn(c):
        return (uni((c,), 0.5, 1.5), nrm((c,), 0.1), nrm((c,), 0.1), uni((c,), 0.5, 1.5))

    p = {}
    p['w1'] = nrm((neck, in_ch), in_ch ** -0.5)
    p['b1'] = nrm((neck,), 0.1)
    p['bn1'] = bn(neck)
    # synthetic mesh operators (stand-ins for icosphere pkl buffers)
    p['G'] = nrm((3, nf, nv_in), nv_in ** -0.5)      # per-face gradient (3 components)
    p['EW'] = nrm((nf, 3))                           # east-west basis at face centers
    p['NS'] = nrm((nf, 3))                           # north-south basis at face centers
    p['L'] = nrm((nv_out, nv_in), nv_in ** -0.5)     # Laplacian rows restricted to coarse verts
    p['F2V'] = nrm((nv_out, nf), nf ** -0.5)         # face -> (coarse) vertex averaging
    p['coeffs'] = nrm((neck, neck, 4), (neck * 4) ** -0.5)
    p['bmesh'] = nrm((neck,), 0.1)
    p['bn2'] = bn(neck)
    p['w3'] = nrm((out_ch, neck), neck ** -0.5)
    p['b3'] = nrm((out_ch,), 0.1)
    p['bn3'] = bn(out_ch)
    p['wsc'] = nrm((out_ch, in_ch), in_ch ** -0.5)
    p['bsc'] = nrm((out_ch,), 0.1)
    p['bnsc'] = bn(out_ch)
    return p, nv_in, nv_out, nf


# ----------------------------------------------------------------------------
# Host-side algebra: BN folding, operator fusion, lane padding.
# ----------------------------------------------------------------------------
def _fold_bn(gamma, beta, mean, var, conv_bias):
    s = gamma / jnp.sqrt(var + EPS)
    t = beta + s * (conv_bias - mean)
    return s, t


def fold_params(p, *, nv_in, nv_out):
    neck, _ = p['w1'].shape
    vpad = ((nv_out + LANE - 1) // LANE) * LANE       # lane-dense output width
    vin_pad = ((nv_in + LANE - 1) // LANE) * LANE     # lane-aligned contraction width

    s1, t1 = _fold_bn(*p['bn1'], p['b1'])
    s2, t2 = _fold_bn(*p['bn2'], p['bmesh'])
    s3, t3 = _fold_bn(*p['bn3'], p['b3'])
    ssc, tsc = _fold_bn(*p['bnsc'], p['bsc'])

    # fold BN scales into the weights / coefficients (only +bias remains in-kernel)
    w1s = p['w1'] * s1[:, None]
    wscs = p['wsc'] * ssc[:, None]
    w3s = p['w3'] * s3[:, None]
    coeffs_s = p['coeffs'] * s2[:, None, None]        # (neck, neck, 4); taps: id, lap, ew, ns

    # fold the EW/NS basis dot products AND the face->vertex averaging into single
    # (Vin, Vout) operators; zero-pad rows to Vin_pad and cols to vpad, hstack -> ONE matmul.
    d_ew = jnp.einsum('fk,kfv->fv', p['EW'], p['G'], precision=HIGHEST)    # (F, Vin)
    d_ns = jnp.einsum('fk,kfv->fv', p['NS'], p['G'], precision=HIGHEST)
    op_lap = p['L'].T                                                      # (Vin, Vout)
    op_ew = jnp.einsum('fv,wf->vw', d_ew, p['F2V'], precision=HIGHEST)     # (Vin, Vout)
    op_ns = jnp.einsum('fv,wf->vw', d_ns, p['F2V'], precision=HIGHEST)

    def pad_op(m):
        return jnp.pad(m, ((0, vin_pad - m.shape[0]), (0, vpad - m.shape[1])))

    op3 = jnp.concatenate([pad_op(op_lap), pad_op(op_ew), pad_op(op_ns)],
                          axis=1)                                          # (Vin_pad, 3*vpad)

    # fused conv1 + shortcut weight (dense, shared across the batch grid)
    wf = jnp.concatenate([w1s, wscs], axis=0)                              # (neck+out, cin)

    def col(t):
        return t[:, None].astype(jnp.float32)

    bf16 = jnp.bfloat16
    return dict(
        wf=wf.astype(bf16), t1=col(t1),
        op3=op3.astype(bf16),
        cid=coeffs_s[:, :, 0].astype(bf16),
        clap=coeffs_s[:, :, 1].astype(bf16),
        cew=coeffs_s[:, :, 2].astype(bf16),
        cns=coeffs_s[:, :, 3].astype(bf16),
        t2=col(t2),
        w3=w3s.astype(bf16), t3=col(t3), tsc=col(tsc),
        vpad=vpad, vin_pad=vin_pad)


# ----------------------------------------------------------------------------
# Pure-JAX reference (mirrors the PyTorch forward, unfolded form).
# ----------------------------------------------------------------------------
def _bn_ref(x, bnp):
    g, b, m, v = bnp
    return (x - m[None, :, None]) * (g / jnp.sqrt(v + EPS))[None, :, None] + b[None, :, None]


def reference_forward(x, p, nv_out):
    # seq1: conv1 -> bn1 -> relu
    y = jnp.einsum('oc,bcv->bov', p['w1'], x, precision=HIGHEST) + p['b1'][None, :, None]
    y = jax.nn.relu(_bn_ref(y, p['bn1']))
    # MeshConv (stride=2)
    grad_face = jnp.einsum('kfv,bcv->bckf', p['G'], y, precision=HIGHEST)
    grad_face = jnp.transpose(grad_face, (0, 1, 3, 2))                     # (B,C,F,3)
    lap = jnp.einsum('wv,bcv->bcw', p['L'], y, precision=HIGHEST)
    ident = y[..., :nv_out]
    gf_ew = jnp.sum(grad_face * p['EW'][None, None], axis=-1)
    gf_ns = jnp.sum(grad_face * p['NS'][None, None], axis=-1)
    gv_ew = jnp.einsum('wf,bcf->bcw', p['F2V'], gf_ew, precision=HIGHEST)
    gv_ns = jnp.einsum('wf,bcf->bcw', p['F2V'], gf_ns, precision=HIGHEST)
    feat = jnp.stack([ident, lap, gv_ew, gv_ns], axis=-1)                  # (B,C,Vout,4)
    mesh = jnp.einsum('oik,bivk->bov', p['coeffs'], feat,
                      precision=HIGHEST) + p['bmesh'][None, :, None]
    z = jax.nn.relu(_bn_ref(mesh, p['bn2']))
    z = jnp.einsum('oc,bcv->bov', p['w3'], z, precision=HIGHEST) + p['b3'][None, :, None]
    z = _bn_ref(z, p['bn3'])
    # seq2: conv_ -> drop -> bn_
    sc = jnp.einsum('oc,bcv->bov', p['wsc'], x, precision=HIGHEST) + p['bsc'][None, :, None]
    sc = _bn_ref(sc[..., :nv_out], p['bnsc'])
    return jax.nn.relu(z + sc)


# ----------------------------------------------------------------------------
if __name__ == "__main__":
    key = jax.random.PRNGKey(0)
    B, in_ch, out_ch, level = 2, 8, 16, 1            # Down(8, 16, level=1)
    kp, kx = jax.random.split(key)

    raw, nv_in, nv_out, nf = init_params(kp, in_ch, out_ch, level)
    x = jax.random.normal(kx, (B, in_ch, nv_in), dtype=jnp.float32)   # (2, 8, 162)

    kargs = fold_params(raw, nv_in=nv_in, nv_out=nv_out)
    out = down_pallas(x, kargs, out_ch=out_ch, nv_out=nv_out)
    out = jax.block_until_ready(out)

    assert out.shape == (B, out_ch, nv_out)
    ref = reference_forward(x, raw, nv_out)
    max_err = float(jnp.max(jnp.abs(out - ref)))
    if not bool(jnp.allclose(out, ref, rtol=5e-2, atol=5e-2)):
        raise AssertionError(f"pallas/reference mismatch, max abs err {max_err}")
    print("KERNEL_OK")
</pallas_src>

<mosaic_0001>
module attributes {stable_mosaic.version = 11 : i64} {
  func.func @down_kernel(%arg0: i32, %arg1: memref<1x8x256xbf16, #tpu.memory_space<vmem>>, %arg2: memref<24x8xbf16, #tpu.memory_space<vmem>>, %arg3: memref<8x1xf32, #tpu.memory_space<vmem>>, %arg4: memref<256x384xbf16, #tpu.memory_space<vmem>>, %arg5: memref<8x8xbf16, #tpu.memory_space<vmem>>, %arg6: memref<8x8xbf16, #tpu.memory_space<vmem>>, %arg7: memref<8x8xbf16, #tpu.memory_space<vmem>>, %arg8: memref<8x8xbf16, #tpu.memory_space<vmem>>, %arg9: memref<8x1xf32, #tpu.memory_space<vmem>>, %arg10: memref<16x8xbf16, #tpu.memory_space<vmem>>, %arg11: memref<16x1xf32, #tpu.memory_space<vmem>>, %arg12: memref<16x1xf32, #tpu.memory_space<vmem>>, %arg13: memref<1x16x128xf32, #tpu.memory_space<vmem>>) attributes {dimension_semantics = [#tpu.dimension_semantics<parallel>], iteration_bounds = array<i64: 2>, scalar_prefetch = 0 : i64, scratch_operands = 0 : i64, tpu.core_type = #tpu.core_type<tc>, window_params = [{transform_indices = @transform_0, window_bounds = array<i64: 1, 8, 256>}, {pipeline_mode = #tpu.pipeline_mode<synchronous>, transform_indices = @transform_1, window_bounds = array<i64: 24, 8>}, {pipeline_mode = #tpu.pipeline_mode<synchronous>, transform_indices = @transform_2, window_bounds = array<i64: 8, 1>}, {pipeline_mode = #tpu.pipeline_mode<synchronous>, transform_indices = @transform_3, window_bounds = array<i64: 256, 384>}, {pipeline_mode = #tpu.pipeline_mode<synchronous>, transform_indices = @transform_4, window_bounds = array<i64: 8, 8>}, {pipeline_mode = #tpu.pipeline_mode<synchronous>, transform_indices = @transform_5, window_bounds = array<i64: 8, 8>}, {pipeline_mode = #tpu.pipeline_mode<synchronous>, transform_indices = @transform_6, window_bounds = array<i64: 8, 8>}, {pipeline_mode = #tpu.pipeline_mode<synchronous>, transform_indices = @transform_7, window_bounds = array<i64: 8, 8>}, {pipeline_mode = #tpu.pipeline_mode<synchronous>, transform_indices = @transform_8, window_bounds = array<i64: 8, 1>}, {pipeline_mode = #tpu.pipeline_mode<synchronous>, transform_indices = @transform_9, window_bounds = array<i64: 16, 8>}, {pipeline_mode = #tpu.pipeline_mode<synchronous>, transform_indices = @transform_10, window_bounds = array<i64: 16, 1>}, {pipeline_mode = #tpu.pipeline_mode<synchronous>, transform_indices = @transform_11, window_bounds = array<i64: 16, 1>}, {transform_indices = @transform_12, window_bounds = array<i64: 1, 16, 128>}]} {
    %c0 = arith.constant 0 : index
    %c0_0 = arith.constant 0 : index
    %c0_1 = arith.constant 0 : index
    %0 = vector.load %arg1[%c0, %c0_0, %c0_1] : memref<1x8x256xbf16, #tpu.memory_space<vmem>>, vector<1x8x256xbf16>
    %1 = vector.shape_cast %0 : vector<1x8x256xbf16> to vector<8x256xbf16>
    %c0_2 = arith.constant 0 : index
    %c0_3 = arith.constant 0 : index
    %2 = vector.load %arg2[%c0_2, %c0_3] : memref<24x8xbf16, #tpu.memory_space<vmem>>, vector<24x8xbf16>
    %cst = arith.constant dense<0.000000e+00> : vector<24x256xf32>
    %3 = tpu.matmul %2, %1, %cst {dimension_numbers = #tpu.dot_dimension_numbers<[1], [0], [0], [1], [0, 0, 1, 1], [], []>} : vector<24x8xbf16>, vector<8x256xbf16>, vector<24x256xf32> -> vector<24x256xf32>
    %4 = vector.extract_strided_slice %3 {offsets = [0, 0], sizes = [8, 256], strides = [1, 1]} : vector<24x256xf32> to vector<8x256xf32>
    %c0_4 = arith.constant 0 : index
    %c0_5 = arith.constant 0 : index
    %5 = vector.load %arg3[%c0_4, %c0_5] : memref<8x1xf32, #tpu.memory_space<vmem>>, vector<8x1xf32>
    %6 = vector.broadcast %5 : vector<8x1xf32> to vector<8x256xf32>
    %7 = arith.addf %4, %6 : vector<8x256xf32>
    %cst_6 = arith.constant 0.000000e+00 : f32
    %8 = vector.broadcast %cst_6 : f32 to vector<8x256xf32>
    %9 = arith.maximumf %7, %8 : vector<8x256xf32>
    %10 = vector.extract_strided_slice %3 {offsets = [8, 0], sizes = [16, 128], strides = [1, 1]} : vector<24x256xf32> to vector<16x128xf32>
    %c0_7 = arith.constant 0 : index
    %c0_8 = arith.constant 0 : index
    %11 = vector.load %arg12[%c0_7, %c0_8] : memref<16x1xf32, #tpu.memory_space<vmem>>, vector<16x1xf32>
    %12 = vector.broadcast %11 : vector<16x1xf32> to vector<16x128xf32>
    %13 = arith.addf %10, %12 : vector<16x128xf32>
    %14 = arith.truncf %9 : vector<8x256xf32> to vector<8x256xbf16>
    %c0_9 = arith.constant 0 : index
    %c0_10 = arith.constant 0 : index
    %15 = vector.load %arg4[%c0_9, %c0_10] : memref<256x384xbf16, #tpu.memory_space<vmem>>, vector<256x384xbf16>
    %cst_11 = arith.constant dense<0.000000e+00> : vector<8x384xf32>
    %16 = tpu.matmul %14, %15, %cst_11 {dimension_numbers = #tpu.dot_dimension_numbers<[1], [0], [0], [1], [0, 0, 1, 1], [], []>} : vector<8x256xbf16>, vector<256x384xbf16>, vector<8x384xf32> -> vector<8x384xf32>
    %17 = arith.truncf %16 : vector<8x384xf32> to vector<8x384xbf16>
    %c0_12 = arith.constant 0 : index
    %c0_13 = arith.constant 0 : index
    %18 = vector.load %arg5[%c0_12, %c0_13] : memref<8x8xbf16, #tpu.memory_space<vmem>>, vector<8x8xbf16>
    %19 = vector.extract_strided_slice %14 {offsets = [0, 0], sizes = [8, 128], strides = [1, 1]} : vector<8x256xbf16> to vector<8x128xbf16>
    %cst_14 = arith.constant dense<0.000000e+00> : vector<8x128xf32>
    %20 = tpu.matmul %18, %19, %cst_14 {dimension_numbers = #tpu.dot_dimension_numbers<[1], [0], [0], [1], [0, 0, 1, 1], [], []>} : vector<8x8xbf16>, vector<8x128xbf16>, vector<8x128xf32> -> vector<8x128xf32>
    %c0_15 = arith.constant 0 : index
    %c0_16 = arith.constant 0 : index
    %21 = vector.load %arg6[%c0_15, %c0_16] : memref<8x8xbf16, #tpu.memory_space<vmem>>, vector<8x8xbf16>
    %22 = vector.extract_strided_slice %17 {offsets = [0, 0], sizes = [8, 128], strides = [1, 1]} : vector<8x384xbf16> to vector<8x128xbf16>
    %cst_17 = arith.constant dense<0.000000e+00> : vector<8x128xf32>
    %23 = tpu.matmul %21, %22, %cst_17 {dimension_numbers = #tpu.dot_dimension_numbers<[1], [0], [0], [1], [0, 0, 1, 1], [], []>} : vector<8x8xbf16>, vector<8x128xbf16>, vector<8x128xf32> -> vector<8x128xf32>
    %24 = arith.addf %20, %23 : vector<8x128xf32>
    %c0_18 = arith.constant 0 : index
    %c0_19 = arith.constant 0 : index
    %25 = vector.load %arg7[%c0_18, %c0_19] : memref<8x8xbf16, #tpu.memory_space<vmem>>, vector<8x8xbf16>
    %26 = vector.extract_strided_slice %17 {offsets = [0, 128], sizes = [8, 128], strides = [1, 1]} : vector<8x384xbf16> to vector<8x128xbf16>
    %cst_20 = arith.constant dense<0.000000e+00> : vector<8x128xf32>
    %27 = tpu.matmul %25, %26, %cst_20 {dimension_numbers = #tpu.dot_dimension_numbers<[1], [0], [0], [1], [0, 0, 1, 1], [], []>} : vector<8x8xbf16>, vector<8x128xbf16>, vector<8x128xf32> -> vector<8x128xf32>
    %28 = arith.addf %24, %27 : vector<8x128xf32>
    %c0_21 = arith.constant 0 : index
    %c0_22 = arith.constant 0 : index
    %29 = vector.load %arg8[%c0_21, %c0_22] : memref<8x8xbf16, #tpu.memory_space<vmem>>, vector<8x8xbf16>
    %30 = vector.extract_strided_slice %17 {offsets = [0, 256], sizes = [8, 128], strides = [1, 1]} : vector<8x384xbf16> to vector<8x128xbf16>
    %cst_23 = arith.constant dense<0.000000e+00> : vector<8x128xf32>
    %31 = tpu.matmul %29, %30, %cst_23 {dimension_numbers = #tpu.dot_dimension_numbers<[1], [0], [0], [1], [0, 0, 1, 1], [], []>} : vector<8x8xbf16>, vector<8x128xbf16>, vector<8x128xf32> -> vector<8x128xf32>
    %32 = arith.addf %28, %31 : vector<8x128xf32>
    %c0_24 = arith.constant 0 : index
    %c0_25 = arith.constant 0 : index
    %33 = vector.load %arg9[%c0_24, %c0_25] : memref<8x1xf32, #tpu.memory_space<vmem>>, vector<8x1xf32>
    %34 = vector.broadcast %33 : vector<8x1xf32> to vector<8x128xf32>
    %35 = arith.addf %32, %34 : vector<8x128xf32>
    %cst_26 = arith.constant 0.000000e+00 : f32
    %36 = vector.broadcast %cst_26 : f32 to vector<8x128xf32>
    %37 = arith.maximumf %35, %36 : vector<8x128xf32>
    %c0_27 = arith.constant 0 : index
    %c0_28 = arith.constant 0 : index
    %38 = vector.load %arg10[%c0_27, %c0_28] : memref<16x8xbf16, #tpu.memory_space<vmem>>, vector<16x8xbf16>
    %39 = arith.truncf %37 : vector<8x128xf32> to vector<8x128xbf16>
    %cst_29 = arith.constant dense<0.000000e+00> : vector<16x128xf32>
    %40 = tpu.matmul %38, %39, %cst_29 {dimension_numbers = #tpu.dot_dimension_numbers<[1], [0], [0], [1], [0, 0, 1, 1], [], []>} : vector<16x8xbf16>, vector<8x128xbf16>, vector<16x128xf32> -> vector<16x128xf32>
    %c0_30 = arith.constant 0 : index
    %c0_31 = arith.constant 0 : index
    %41 = vector.load %arg11[%c0_30, %c0_31] : memref<16x1xf32, #tpu.memory_space<vmem>>, vector<16x1xf32>
    %42 = vector.broadcast %41 : vector<16x1xf32> to vector<16x128xf32>
    %43 = arith.addf %40, %42 : vector<16x128xf32>
    %44 = arith.addf %43, %13 : vector<16x128xf32>
    %cst_32 = arith.constant 0.000000e+00 : f32
    %45 = vector.broadcast %cst_32 : f32 to vector<16x128xf32>
    %46 = arith.maximumf %44, %45 : vector<16x128xf32>
    %c0_33 = arith.constant 0 : index
    %c0_34 = arith.constant 0 : index
    %c0_35 = arith.constant 0 : index
    %47 = vector.load %arg13[%c0_33, %c0_34, %c0_35] : memref<1x16x128xf32, #tpu.memory_space<vmem>>, vector<1x16x128xf32>
    %48 = vector.shape_cast %47 : vector<1x16x128xf32> to vector<16x128xf32>
    %49 = vector.shape_cast %46 : vector<16x128xf32> to vector<1x16x128xf32>
    tpu.vector_store %arg13[%c0_33, %c0_34, %c0_35], %49 {strides = array<i32>} : memref<1x16x128xf32, #tpu.memory_space<vmem>>, vector<1x16x128xf32>,
    return
  }
  func.func @transform_0(%arg0: i32) -> (i32, i32, i32) {
    %c0_i32 = arith.constant 0 : i32
    %c0_i32_0 = arith.constant 0 : i32
    %c0_i32_1 = arith.constant 0 : i32
    return %arg0, %c0_i32, %c0_i32_0 : i32, i32, i32
  }
  func.func @transform_1(%arg0: i32) -> (i32, i32) {
    %c0_i32 = arith.constant 0 : i32
    %c0_i32_0 = arith.constant 0 : i32
    %c0_i32_1 = arith.constant 0 : i32
    return %c0_i32, %c0_i32_0 : i32, i32
  }
  func.func @transform_2(%arg0: i32) -> (i32, i32) {
    %c0_i32 = arith.constant 0 : i32
    %c0_i32_0 = arith.constant 0 : i32
    %c0_i32_1 = arith.constant 0 : i32
    return %c0_i32, %c0_i32_0 : i32, i32
  }
  func.func @transform_3(%arg0: i32) -> (i32, i32) {
    %c0_i32 = arith.constant 0 : i32
    %c0_i32_0 = arith.constant 0 : i32
    %c0_i32_1 = arith.constant 0 : i32
    return %c0_i32, %c0_i32_0 : i32, i32
  }
  func.func @transform_4(%arg0: i32) -> (i32, i32) {
    %c0_i32 = arith.constant 0 : i32
    %c0_i32_0 = arith.constant 0 : i32
    %c0_i32_1 = arith.constant 0 : i32
    return %c0_i32, %c0_i32_0 : i32, i32
  }
  func.func @transform_5(%arg0: i32) -> (i32, i32) {
    %c0_i32 = arith.constant 0 : i32
    %c0_i32_0 = arith.constant 0 : i32
    %c0_i32_1 = arith.constant 0 : i32
    return %c0_i32, %c0_i32_0 : i32, i32
  }
  func.func @transform_6(%arg0: i32) -> (i32, i32) {
    %c0_i32 = arith.constant 0 : i32
    %c0_i32_0 = arith.constant 0 : i32
    %c0_i32_1 = arith.constant 0 : i32
    return %c0_i32, %c0_i32_0 : i32, i32
  }
  func.func @transform_7(%arg0: i32) -> (i32, i32) {
    %c0_i32 = arith.constant 0 : i32
    %c0_i32_0 = arith.constant 0 : i32
    %c0_i32_1 = arith.constant 0 : i32
    return %c0_i32, %c0_i32_0 : i32, i32
  }
  func.func @transform_8(%arg0: i32) -> (i32, i32) {
    %c0_i32 = arith.constant 0 : i32
    %c0_i32_0 = arith.constant 0 : i32
    %c0_i32_1 = arith.constant 0 : i32
    return %c0_i32, %c0_i32_0 : i32, i32
  }
  func.func @transform_9(%arg0: i32) -> (i32, i32) {
    %c0_i32 = arith.constant 0 : i32
    %c0_i32_0 = arith.constant 0 : i32
    %c0_i32_1 = arith.constant 0 : i32
    return %c0_i32, %c0_i32_0 : i32, i32
  }
  func.func @transform_10(%arg0: i32) -> (i32, i32) {
    %c0_i32 = arith.constant 0 : i32
    %c0_i32_0 = arith.constant 0 : i32
    %c0_i32_1 = arith.constant 0 : i32
    return %c0_i32, %c0_i32_0 : i32, i32
  }
  func.func @transform_11(%arg0: i32) -> (i32, i32) {
    %c0_i32 = arith.constant 0 : i32
    %c0_i32_0 = arith.constant 0 : i32
    %c0_i32_1 = arith.constant 0 : i32
    return %c0_i32, %c0_i32_0 : i32, i32
  }
  func.func @transform_12(%arg0: i32) -> (i32, i32, i32) {
    %c0_i32 = arith.constant 0 : i32
    %c0_i32_0 = arith.constant 0 : i32
    %c0_i32_1 = arith.constant 0 : i32
    return %arg0, %c0_i32, %c0_i32_0 : i32, i32, i32
  }
}

</mosaic_0001>

<bundles_post_ra>
// kernel: tpu_custom_call.1
= control target key start
LH: loop header
LB: loop body
LE: loop exit
PB: predicated region body
PF: predicated region fallthrough
CT: control target
= control target key end

     0   :  { %s1814_s0 = inlined_call_operand.vmem [shape: bf16[2,8,256], index: 0, kind: input, shape index: {}]   ;;  %s1815_s1 = inlined_call_operand.vmem [shape: bf16[24,8], index: 1, kind: input, shape index: {}]   ;;  %s1816_s2 = inlined_call_operand.vmem [shape: f32[8,1], index: 2, kind: input, shape index: {}]   ;;  %s1817_s3 = inlined_call_operand.hbm [shape: bf16[256,384], index: 3, kind: input, shape index: {}]   ;;  %s1818_s4 = inlined_call_operand.vmem [shape: bf16[8,8], index: 4, kind: input, shape index: {}]   ;;  %s1819_s5 = inlined_call_operand.vmem [shape: bf16[8,8], index: 5, kind: input, shape index: {}]   ;;  %s1820_s6 = inlined_call_operand.vmem [shape: bf16[8,8], index: 6, kind: input, shape index: {}]   ;;  %s1821_s7 = inlined_call_operand.vmem [shape: bf16[8,8], index: 7, kind: input, shape index: {}]   ;;  %s1822_s8 = inlined_call_operand.vmem [shape: f32[8,1], index: 8, kind: input, shape index: {}]   ;;  %s1823_s9 = inlined_call_operand.vmem [shape: bf16[16,8], index: 9, kind: input, shape index: {}]   ;;  %s1824_s10 = inlined_call_operand.vmem [shape: f32[16,1], index: 10, kind: input, shape index: {}]   ;;  %s1825_s11 = inlined_call_operand.vmem [shape: f32[16,1], index: 11, kind: input, shape index: {}]   ;;  %s1826_s12 = inlined_call_operand.hbm [shape: f32[2,16,128], index: 12, kind: output, shape index: {}]  }
   0x1   :  { %1827 = sst [smem:[#allocation8_spill]] %s1814_s0 }
   0x2   :  { %1828 = sst [smem:[#allocation9_spill]] %s1815_s1 }
   0x3   :  { %1829 = sst [smem:[#allocation10_spill]] %s1816_s2 }
   0x4   :  { %17 = vsyncpa [#allocation3], 0 }
   0x5   :  { %18 = vsyncpa [#allocation4], 0 }
   0x6   :  { %20 = vsyncpa [#allocation4 + $0x1], 0  ;;  %s1658_s21 = smov 0   ;;  %s1660_s22 = smov 0  }
   0x7   :  { %s1662_s23 = smov 0   ;;  %s1664_s24 = smov 0  }
   0x8 LB: > { %s1679_s25 = sadd.s32 4294967295, %s1585_s24   ;;  %s1156_s26 = sadd.s32 4294967294, %s1585_s24   ;;  %s1585_s24 = sphi %s1664_s24, %s1838_s24   ;;  %s1581_s23 = sphi %s1662_s23, %s1837_s23   ;;  %s1577_s22 = sphi %s1660_s22, %s1836_s22   ;;  %s1573_s21 = sphi %s1658_s21, %s1835_s21  }
   0x9   : > { %s1683_s27 = sadd.s32 1, %s1585_s24   ;;  %s290_s28 = sadd.s32 1, %s1581_s23 }
   0xa   : > { %s287_s29 = ssub.s32 %s1585_s24, %s1683_s27  ;;  %p300_p0 = scmp.ne.s32.totalorder %s1581_s23, %s1577_s22 }
   0xb   : > { %p288_p1 = scmp.eq.s32.totalorder %s287_s29, 0  ;;  %p301_p2 = scmp.eq.s32.totalorder %s1679_s25, 1 }
   0xc   : > { %p306_p3 = scmp.ne.s32.totalorder %s1577_s22, %s1573_s21  ;;  %p307_p4 = scmp.eq.s32.totalorder %s1156_s26, 1 }
   0xd   : > { %s1694_s30 = scalar_select %p288_p1, %s1581_s23, %s290_s28  }
   0xe   : > { %p1696_p5 = por %p301_p2, %p300_p0  ;;  %p1700_p6 = por %p307_p4, %p306_p3 }
   0xf   : > { %p1157_p7 = scmp.ge.s32.totalorder %s1585_s24, 1  ;;  %p314_p8 = scmp.lt.s32.totalorder %s1585_s24, 3 }
  0x10   : > { %p1445_p9 = scmp.eq.s32.totalorder %s1679_s25, 0  ;;  %s331_s17 = sshll.u32 %s1817_s3, 4  ;;  %s332_s17 = int_to_ptr.hbm [resolvable:$true] %s331_s17 }
  0x11   : > { %p315_p10 = pnand %p1157_p7, %p314_p8  ;;  %s1587_s18 = smov [#allocation2]  }
  0x12   : > { %s333_s19 = sshll.u32 %s1587_s18, 4  ;;  %s1588_s20 = smov 192   ;;  %s334_s19 = int_to_ptr.vmem [resolvable:$true] %s333_s19 }
  0x13   : > { %p1437_p11 = pneg %p315_p10  ;;  %s1589_s26 = smov 12  }
  0x14   : > { %381 = sbr.rel (%p315_p10) target bundleno = 624 (0x270), region = 68 }
  0x15   : > { %p1438_p12 = pnand %p1445_p9, %p1437_p11 }
  0x17   : > { %1440 = dma.hbm_to_vmem [thread:$0]  (!%p1438_p12), %s332_s17, 6144, %s334_s19, [#allocation3], %s1588_s20, %s1588_s20, %s1589_s26  }
  0x19   : > { %1564 = dma.done.wait (%p1445_p9), [#allocation3], 6144  }
  0x1a   : > { %1566 = vsyncadd (%p1445_p9), [#allocation3], 4294961152  ;;  %p424_p13 = scmp.lt.s32.totalorder %s1679_s25, 1  ;;  %v1590_v0 = vmov 0   ;;  %s1832_s0 = sld [smem:[#allocation8_spill]]  ;;  %vm454_vm0 = vcmask 1043456  }
  0x1b   : > { %1486 = vset.pattern.permute.xlu0 %v1590_v0  ;;  %1487 = vset.pattern.permute.xlu1 %v1590_v0  ;;  %s1833_s2 = sld [smem:[#allocation10_spill]]  ;;  %v505_v5 = vld [vmem:[%s1825_s11] sm:$0xff]  ;;  %v1259_v6 = vld [vmem:[#allocation2 + $0xa8] sm:$0xf]  ;;  %v1403_v7 = vld [vmem:[#allocation2 + $0xb0] sm:$0xf0] }
  0x1c   : > { %s425_s28 = scalar_select %p424_p13, %s1679_s25, 1  ;;  %1488 = vset.pattern.permute.xlu2 %v1590_v0  ;;  %509 = vperm.xlu1 %1487, %v505_v5   ;;  %v1355_v8 = vld [vmem:[#allocation2 + $0x168] sm:$0xf]  ;;  %v1427_v9 = vld [vmem:[#allocation2 + $0x170] sm:$0xf0]  ;;  %v1260_v12 = vor.u32 %v1403_v7, %v1259_v6  ;;  %vm447_vm1 = vcmask 64512  }
  0x1d   : > { %v1356_v13 = vor.u32 %v1427_v9, %v1355_v8  ;;  %v1247_v14 = vld [vmem:[#allocation2 + $0x90] sm:$0xf]  ;;  %v1400_v15 = vld [vmem:[#allocation2 + $0x98] sm:$0xf0]  ;;  %s1834_s1 = sld [smem:[#allocation9_spill]]  ;;  %v1012_v21 = vld [vmem:[%s1822_s8] sm:$0xff] }
  0x1e   : > { %s1379_s29 = sshll.u32 %s425_s28, 3  ;;  %v1343_v16 = vld [vmem:[#allocation2 + $0x150] sm:$0xf]  ;;  %v1424_v17 = vld [vmem:[#allocation2 + $0x158] sm:$0xf0]  ;;  %847 = vmatpush.bf16.msra.mxu2 %v1260_v12  ;;  %v1248_v22 = vor.u32 %v1400_v15, %v1247_v14  ;;  %s1430_s19 = sshll.u32 %s1679_s25, 4 }
  0x1f   : > { %860 = vmatpush.bf16.msra.mxu3 %v1356_v13  ;;  %v1235_v23 = vld [vmem:[#allocation2 + $0x78] sm:$0xf]  ;;  %v1397_v24 = vld [vmem:[#allocation2 + $0x80] sm:$0xf0]  ;;  %v1344_v25 = vor.u32 %v1424_v17, %v1343_v16  ;;  %v1426_v27 = vld [vmem:[#allocation2 + $0x16c] sm:$0xf] }
  0x20   : > { %s428_s17 = scalar_lea.vmem %s1832_s0, %s1379_s29  ;;  %v1331_v26 = vld [vmem:[#allocation2 + $0x138] sm:$0xf]  ;;  %v1421_v29 = vld [vmem:[#allocation2 + $0x140] sm:$0xf0]  ;;  %v1402_v31 = vld [vmem:[#allocation2 + $0xac] sm:$0xf]  ;;  %v1236_v34 = vor.u32 %v1397_v24, %v1235_v23  ;;  %s1078_s29 = scalar_lea.hbm %s1826_s12, %s1430_s19 }
  0x21   : > { %v430_v1 = vld [vmem:[%s428_s17] sm:$0xff]  ;;  %v1357_v28 = vld [vmem:[#allocation2 + $0x174] sm:$0xf0]  ;;  %v1423_v35 = vld [vmem:[#allocation2 + $0x154] sm:$0xf]  ;;  %v1332_v38 = vor.u32 %v1421_v29, %v1331_v26  ;;  %s421_s17 = sand.u32 1, %s1577_s22  }
  0x22   : > { %v495_v2 = vld [vmem:[%s1833_s2] sm:$0xff]  ;;  %v443_v3 = vunpack.c.l.b16 %v430_v1  ;;  %v444_v4 = vunpack.c.h.b16 %v430_v1  ;;  %v1360_v30 = vor.u32 %v1426_v27, %v1357_v28  ;;  %v1261_v32 = vld [vmem:[#allocation2 + $0xb4] sm:$0xf0]  ;;  %848 = vmatpush.bf16.msra.mxu2 %v1248_v22  ;;  %v1399_v37 = vld [vmem:[#allocation2 + $0x94] sm:$0xf]  ;;  %s1162_s18 = sshll.u32 %s421_s17, 4 }
  0x23   : > { %498 = vperm.xlu0 %1486, %v495_v2   ;;  %v1380_v20 = vld [vmem:[%s1834_s1] sm:$0xff]  ;;  %v1264_v33 = vor.u32 %v1402_v31, %v1261_v32  ;;  %861 = vmatpush.bf16.msra.mxu3 %v1344_v25  ;;  %v1394_v40 = vld [vmem:[#allocation2 + $0x68] sm:$0xf0]  ;;  %v1420_v46 = vld [vmem:[#allocation2 + $0x13c] sm:$0xf]  ;;  %s423_s20 = scalar_lea.vmem [#allocation5], %s1162_s18 }
  0x24   : > { %v445_v10 = vpack.c.b16 %v443_v3, %v443_v3  ;;  %v446_v11 = vpack.c.b16 %v444_v4, %v444_v4  ;;  %v1345_v36 = vld [vmem:[#allocation2 + $0x15c] sm:$0xf0]  ;;  %v1418_v44 = vld [vmem:[#allocation2 + $0x128] sm:$0xf0]  ;;  %v1333_v47 = vld [vmem:[#allocation2 + $0x144] sm:$0xf0] }
  0x25   : > { %v1223_v39 = vld [vmem:[#allocation2 + $0x60] sm:$0xf]  ;;  %v1348_v41 = vor.u32 %v1423_v35, %v1345_v36  ;;  %v1396_v48 = vld [vmem:[#allocation2 + $0x7c] sm:$0xf]  ;;  %v1237_v49 = vld [vmem:[#allocation2 + $0x84] sm:$0xf0]  ;;  %v1336_v55 = vor.u32 %v1420_v46, %v1333_v47 }
  0x26   : > { %v456_v18 = vsel %vm454_vm0, %v445_v10, 0  ;;  %v459_v19 = vsel %vm454_vm0, %v446_v11, 0  ;;  %v1249_v42 = vld [vmem:[#allocation2 + $0x9c] sm:$0xf0]  ;;  %849 = vmatpush.bf16.msra.mxu2 %v1236_v34  ;;  %v1224_v50 = vor.u32 %v1394_v40, %v1223_v39  ;;  %v1211_v52 = vld [vmem:[#allocation2 + $0x48] sm:$0xf]  ;;  %v1240_v57 = vor.u32 %v1396_v48, %v1237_v49 }
  0x27   : > { %468 = vmatpush.bf16.msra.mxu0 %v456_v18  ;;  %486 = vmatpush.bf16.msra.mxu1 %v459_v19  ;;  %v1319_v43 = vld [vmem:[#allocation2 + $0x120] sm:$0xf]  ;;  %v1252_v45 = vor.u32 %v1399_v37, %v1249_v42  ;;  %v1391_v53 = vld [vmem:[#allocation2 + $0x50] sm:$0xf0]  ;;  %v1307_v54 = vld [vmem:[#allocation2 + $0x108] sm:$0xf] }
  0x28   : > { %862 = vmatpush.bf16.msra.mxu3 %v1332_v38  ;;  %v1320_v51 = vor.u32 %v1418_v44, %v1319_v43  ;;  %v1415_v56 = vld [vmem:[#allocation2 + $0x110] sm:$0xf0]  ;;  %v1417_v58 = vld [vmem:[#allocation2 + $0x124] sm:$0xf]  ;;  %v1321_v59 = vld [vmem:[#allocation2 + $0x12c] sm:$0xf0]  ;;  %v1212_v60 = vor.u32 %v1391_v53, %v1211_v52 }
  0x29   : > { %v1308_v61 = vor.u32 %v1415_v56, %v1307_v54  ;;  %v1199_v62 = vld [vmem:[#allocation2 + $0x30] sm:$0xf]  ;;  %v1388_v63 = vld [vmem:[#allocation2 + $0x38] sm:$0xf0]  ;;  %v1324_v0 = vor.u32 %v1417_v58, %v1321_v59  ;;  %v1187_v5 = vld [vmem:[#allocation2 + $0x18] sm:$0xf] }
  0x2a   : > { %1169 = vmatmul.msk.bf16.vlgmr.msra.gmra.mxu0 %vm447_vm1, %v1380_v20  ;;  %1171 = vmatmul.msk.bf16.vlgmr.msra.gmra.mxu1 %vm447_vm1, %v1380_v20  ;;  %v1295_v1 = vld [vmem:[#allocation2 + $0xf0] sm:$0xf]  ;;  %v1412_v2 = vld [vmem:[#allocation2 + $0xf8] sm:$0xf0]  ;;  %v1200_v3 = vor.u32 %v1388_v63, %v1199_v62  ;;  %v1385_v6 = vld [vmem:[#allocation2 + $0x20] sm:$0xf0] }
  0x2b   : > { %1015 = vperm.xlu0 %1486, %v1012_v21   ;;  %886 = vmatpush.bf16.msrb.mxu1 %v1360_v30  ;;  %v1296_v4 = vor.u32 %v1412_v2, %v1295_v1  ;;  %v1283_v7 = vld [vmem:[#allocation2 + $0xd8] sm:$0xf]  ;;  %v1409_v8 = vld [vmem:[#allocation2 + $0xe0] sm:$0xf0]  ;;  %v1188_v9 = vor.u32 %v1385_v6, %v1187_v5  ;;  %v1225_v12 = vld [vmem:[#allocation2 + $0x6c] sm:$0xf0] }
  0x2c   : > { %873 = vmatpush.bf16.msrb.mxu0 %v1264_v33  ;;  %850 = vmatpush.bf16.msra.mxu2 %v1224_v50  ;;  %v1284_v10 = vor.u32 %v1409_v8, %v1283_v7  ;;  %v1393_v11 = vld [vmem:[#allocation2 + $0x64] sm:$0xf]  ;;  %v433_v13 = vld [vmem:[%s1834_s1 + $0x8] sm:$0xf]  ;;  %v1175_v16 = vld [vmem:[#allocation2] sm:$0xf] }
  0x2d   : > { %863 = vmatpush.bf16.msra.mxu3 %v1320_v51  ;;  %v1228_v14 = vor.u32 %v1393_v11, %v1225_v12  ;;  %v439_v15 = vunpack.c.l.b16 %v433_v13  ;;  %v1382_v17 = vld [vmem:[#allocation2 + $0x8] sm:$0xf0]  ;;  %v1271_v18 = vld [vmem:[#allocation2 + $0xc0] sm:$0xf]  ;;  %v1309_v22 = vld [vmem:[#allocation2 + $0x114] sm:$0xf0] }
  0x2e   : > { %v1176_v19 = vor.u32 %v1382_v17, %v1175_v16  ;;  %v1406_v20 = vld [vmem:[#allocation2 + $0xc8] sm:$0xf0]  ;;  %v1213_v27 = vld [vmem:[#allocation2 + $0x54] sm:$0xf0]  ;;  %v1267_v28 = vld [vmem:[#allocation2 + $0xb0] sm:$0xf] }
  0x2f   : > { %887 = vmatpush.bf16.msrb.mxu1 %v1348_v41  ;;  %v1414_v21 = vld [vmem:[#allocation2 + $0x10c] sm:$0xf]  ;;  %v441_v23 = vpack.c.b16 %v439_v15, %v439_v15  ;;  %v1272_v24 = vor.u32 %v1406_v20, %v1271_v18  ;;  %v1404_v30 = vld [vmem:[#allocation2 + $0xb8] sm:$0xf0]  ;;  %v1363_v31 = vld [vmem:[#allocation2 + $0x170] sm:$0xf] }
  0x30   : > { %874 = vmatpush.bf16.msrb.mxu0 %v1252_v45  ;;  %851 = vmatpush.bf16.msra.mxu2 %v1212_v60  ;;  %v1312_v25 = vor.u32 %v1414_v21, %v1309_v22  ;;  %v1390_v26 = vld [vmem:[#allocation2 + $0x4c] sm:$0xf]  ;;  %v1428_v32 = vld [vmem:[#allocation2 + $0x178] sm:$0xf0]  ;;  %v1268_v33 = vor.u32 %v1404_v30, %v1267_v28  ;;  %v1411_v35 = vld [vmem:[#allocation2 + $0xf4] sm:$0xf] }
  0x31   : > { %864 = vmatpush.bf16.msra.mxu3 %v1308_v61  ;;  %v1216_v29 = vor.u32 %v1390_v26, %v1213_v27  ;;  %v1364_v34 = vor.u32 %v1428_v32, %v1363_v31  ;;  %v1297_v36 = vld [vmem:[#allocation2 + $0xfc] sm:$0xf0]  ;;  %v1255_v37 = vld [vmem:[#allocation2 + $0x98] sm:$0xf]  ;;  %v1401_v39 = vld [vmem:[#allocation2 + $0xa0] sm:$0xf0] }
  0x32   : > { %v1300_v38 = vor.u32 %v1411_v35, %v1297_v36  ;;  %v1351_v40 = vld [vmem:[#allocation2 + $0x158] sm:$0xf]  ;;  %v1425_v41 = vld [vmem:[#allocation2 + $0x160] sm:$0xf0]  ;;  %v1256_v42 = vor.u32 %v1401_v39, %v1255_v37  ;;  %v1387_v44 = vld [vmem:[#allocation2 + $0x34] sm:$0xf] }
  0x33   : > { %888 = vmatpush.bf16.msrb.mxu1 %v1336_v55  ;;  %v1352_v43 = vor.u32 %v1425_v41, %v1351_v40  ;;  %v1201_v45 = vld [vmem:[#allocation2 + $0x3c] sm:$0xf0]  ;;  %v1408_v47 = vld [vmem:[#allocation2 + $0xdc] sm:$0xf]  ;;  %v1285_v48 = vld [vmem:[#allocation2 + $0xe4] sm:$0xf0] }
  0x34   : > { %875 = vmatpush.bf16.msrb.mxu0 %v1240_v57  ;;  %852 = vmatpush.bf16.msra.mxu2 %v1200_v3  ;;  %v1204_v46 = vor.u32 %v1387_v44, %v1201_v45  ;;  %v1288_v49 = vor.u32 %v1408_v47, %v1285_v48  ;;  %v1384_v50 = vld [vmem:[#allocation2 + $0x1c] sm:$0xf]  ;;  %v1189_v51 = vld [vmem:[#allocation2 + $0x24] sm:$0xf0]  ;;  %v1243_v52 = vld [vmem:[#allocation2 + $0x80] sm:$0xf] }
  0x35   : > { %865 = vmatpush.bf16.msra.mxu3 %v1296_v4  ;;  %v1192_v53 = vor.u32 %v1384_v50, %v1189_v51  ;;  %v1398_v54 = vld [vmem:[#allocation2 + $0x88] sm:$0xf0]  ;;  %v1339_v55 = vld [vmem:[#allocation2 + $0x140] sm:$0xf]  ;;  %v1405_v59 = vld [vmem:[#allocation2 + $0xc4] sm:$0xf] }
  0x36   : > { %v1422_v56 = vld [vmem:[#allocation2 + $0x148] sm:$0xf0]  ;;  %v1244_v57 = vor.u32 %v1398_v54, %v1243_v52  ;;  %v1273_v60 = vld [vmem:[#allocation2 + $0xcc] sm:$0xf0]  ;;  %v1231_v62 = vld [vmem:[#allocation2 + $0x68] sm:$0xf] }
  0x37   : > { %889 = vmatpush.bf16.msrb.mxu1 %v1324_v0  ;;  %v1340_v58 = vor.u32 %v1422_v56, %v1339_v55  ;;  %v1276_v61 = vor.u32 %v1405_v59, %v1273_v60  ;;  %v1395_v63 = vld [vmem:[#allocation2 + $0x70] sm:$0xf0]  ;;  %v1327_v0 = vld [vmem:[#allocation2 + $0x128] sm:$0xf]  ;;  %v1381_v3 = vld [vmem:[#allocation2 + $0x4] sm:$0xf] }
  0x38   : > { %853 = vmatpush.bf16.msra.mxu2 %v1188_v9  ;;  %876 = vmatpush.bf16.msrb.mxu0 %v1228_v14  ;;  %v1232_v1 = vor.u32 %v1395_v63, %v1231_v62  ;;  %v1419_v2 = vld [vmem:[#allocation2 + $0x130] sm:$0xf0]  ;;  %v1177_v4 = vld [vmem:[#allocation2 + $0xc] sm:$0xf0]  ;;  %v1392_v8 = vld [vmem:[#allocation2 + $0x58] sm:$0xf0] }
  0x39   : > { %866 = vmatpush.bf16.msra.mxu3 %v1284_v10  ;;  %v1328_v5 = vor.u32 %v1419_v2, %v1327_v0  ;;  %v1180_v6 = vor.u32 %v1381_v3, %v1177_v4  ;;  %v1219_v7 = vld [vmem:[#allocation2 + $0x50] sm:$0xf]  ;;  %v1416_v11 = vld [vmem:[#allocation2 + $0x118] sm:$0xf0]  ;;  %v506_v13 = vld [vmem:[%s1825_s11 + $0x8] sm:$0xff]  ;;  %s1079_s15 = sshll.u32 %s423_s20, 4  ;;  %s1080_s15 = int_to_ptr.vmem [resolvable:$true] %s1079_s15 }
  0x3a   : > { %1170 = vmatmul.msk.bf16.gmra.mxu0 %vm447_vm1, %v441_v23  ;;  %1172 = vmatmul.msk.bf16.gmra.mxu1 %vm447_vm1, %v441_v23  ;;  %v1315_v9 = vld [vmem:[#allocation2 + $0x110] sm:$0xf]  ;;  %v1220_v10 = vor.u32 %v1392_v8, %v1219_v7  ;;  %v1207_v14 = vld [vmem:[#allocation2 + $0x38] sm:$0xf]  ;;  %v1389_v15 = vld [vmem:[#allocation2 + $0x40] sm:$0xf0] }
  0x3b   : > { %890 = vmatpush.bf16.msrb.mxu1 %v1312_v25  ;;  %v1316_v12 = vor.u32 %v1416_v11, %v1315_v9  ;;  %514 = vperm.xlu1 %1487, %v506_v13   ;;  %v1208_v16 = vor.u32 %v1389_v15, %v1207_v14  ;;  %v1303_v17 = vld [vmem:[#allocation2 + $0xf8] sm:$0xf]  ;;  %v1413_v18 = vld [vmem:[#allocation2 + $0x100] sm:$0xf0]  ;;  %v1195_v20 = vld [vmem:[#allocation2 + $0x20] sm:$0xf] }
  0x3c   : > { %854 = vmatpush.bf16.msra.mxu2 %v1176_v19  ;;  %877 = vmatpush.bf16.msrb.mxu0 %v1216_v29  ;;  %v1304_v19 = vor.u32 %v1413_v18, %v1303_v17  ;;  %v1386_v21 = vld [vmem:[#allocation2 + $0x28] sm:$0xf0]  ;;  %v1291_v22 = vld [vmem:[#allocation2 + $0xe0] sm:$0xf]  ;;  %v1183_v26 = vld [vmem:[#allocation2 + $0x8] sm:$0xf] }
  0x3d   : > { %867 = vmatpush.bf16.msra.mxu3 %v1272_v24  ;;  %v1410_v23 = vld [vmem:[#allocation2 + $0xe8] sm:$0xf0]  ;;  %v1196_v24 = vor.u32 %v1386_v21, %v1195_v20  ;;  %v1383_v27 = vld [vmem:[#allocation2 + $0x10] sm:$0xf0]  ;;  %v1279_v28 = vld [vmem:[#allocation2 + $0xc8] sm:$0xf] }
  0x3e   : > { %v1292_v25 = vor.u32 %v1410_v23, %v1291_v22  ;;  %v1407_v29 = vld [vmem:[#allocation2 + $0xd0] sm:$0xf0]  ;;  %v1184_v30 = vor.u32 %v1383_v27, %v1183_v26  ;;  %v927_v51 = vld [vmem:[%s1818_s4] sm:$0xf]  ;;  %v1024_v17 = vld [vmem:[%s1824_s10 + $0x8] sm:$0xff]  ;;  %s1081_s16 = sshll.u32 %s1078_s29, 4  ;;  %s1082_s16 = int_to_ptr.hbm [resolvable:$true] %s1081_s16 }
  0x3f   : > { %891 = vmatpush.bf16.msrb.mxu1 %v1300_v38  ;;  %v1280_v31 = vor.u32 %v1407_v29, %v1279_v28  ;;  %v928_v63 = vld [vmem:[%s1819_s5] sm:$0xf]  ;;  %s1067_s25 = scalar_lea.sflag [#allocation4], %s421_s17  ;;  %s1533_s18 = sshra.s32 %s1082_s16, 4  ;;  %s1534_s18 = int_to_ptr.hbm [resolvable:$true] %s1533_s18 }
  0x40   : > { %899 = vmatpush.bf16.msrb.mxu2 %v1268_v33  ;;  %878 = vmatpush.bf16.msrb.mxu0 %v1204_v46  ;;  %v967_v9 = vld [vmem:[%s1820_s6] sm:$0xf]  ;;  %s1535_s0 = scalar_lea.hbm %s1534_s18, 16  ;;  %s1539_s28 = scalar_lea.hbm %s1826_s12, 32 }
  0x41   : > { %912 = vmatpush.bf16.msrb.mxu3 %v1364_v34  ;;  %v1023_v15 = vld [vmem:[%s1824_s10] sm:$0xff]  ;;  %p1536_p0 = scmp.ne.s32.totalorder %s1534_s18, %s1535_s0  ;;  %p1540_p3 = scmp.lt.s32.totalorder %s1534_s18, %s1826_s12 }
  0x42   : > { %1027 = vperm.xlu2 %1488, %v1023_v15   ;;  %p1541_p4 = scmp.lt.s32.totalorder %s1539_s28, %s1535_s0 }
  0x43   : > { %892 = vmatpush.bf16.msrb.mxu1 %v1288_v49  ;;  %p1537_p1 = pnand %p1536_p0, %p1696_p5 }
  0x44   : > { %900 = vmatpush.bf16.msrb.mxu2 %v1256_v42  ;;  %879 = vmatpush.bf16.msrb.mxu0 %v1192_v53  ;;  %p1542_p7 = por %p1541_p4, %p1540_p3 }
  0x45   : > { %913 = vmatpush.bf16.msrb.mxu3 %v1352_v43  ;;  %p1538_p2 = pneg %p1537_p1 }
  0x47   : > { %893 = vmatpush.bf16.msrb.mxu1 %v1276_v61  ;;  %p1543_p8 = pnand %p1542_p7, %p1538_p2 }
  0x48   : > { %901 = vmatpush.bf16.msrb.mxu2 %v1244_v57  ;;  %880 = vmatpush.bf16.msrb.mxu0 %v1180_v6 }
  0x49   : > { %914 = vmatpush.bf16.msrb.mxu3 %v1340_v58 }
  0x4a   : > { %1032 = vperm.xlu2 %1488, %v1024_v17  }
  0x4c   : > { %902 = vmatpush.bf16.msrb.mxu2 %v1232_v1 }
  0x4d   : > { %915 = vmatpush.bf16.msrb.mxu3 %v1328_v5 }
  0x50   : > { %903 = vmatpush.bf16.msrb.mxu2 %v1220_v10  ;;  %v991_v10 = vld [vmem:[%s1821_s7] sm:$0xf] }
  0x51   : > { %916 = vmatpush.bf16.msrb.mxu3 %v1316_v12 }
  0x54   : > { %904 = vmatpush.bf16.msrb.mxu2 %v1208_v16 }
  0x55   : > { %917 = vmatpush.bf16.msrb.mxu3 %v1304_v19 }
  0x58   : > { %905 = vmatpush.bf16.msrb.mxu2 %v1196_v24 }
  0x59   : > { %918 = vmatpush.bf16.msrb.mxu3 %v1292_v25 }
  0x5c   : > { %906 = vmatpush.bf16.msrb.mxu2 %v1184_v30 }
  0x5d   : > { %919 = vmatpush.bf16.msrb.mxu3 %v1280_v31  ;;  %v1429_v31 = vld [vmem:[%s1823_s9] sm:$0xff] }
  0x95   : > { %v499_v32 = vpop.permute.xlu0 %498 }
  0x9d   : > { %v1016_v24 = vpop.permute.xlu0 %1015 }
  0xa7   : > { %v470_v33 = vpop.f32.mrf.mxu0  ;;  %v488_v34 = vpop.f32.mrf.mxu1 }
  0xa8   : > { %v501_v35 = vadd.f32 %v499_v32, %v470_v33  ;;  %v502_v36 = vadd.f32 %v499_v32, %v488_v34  ;;  %v510_v32 = vpop.permute.xlu1 %509  ;;  %v1028_v33 = vpop.permute.xlu2 %1027 }
  0xaa   : > { %v503_v37 = vmax.f32 %v501_v35, 0.0  ;;  %v504_v38 = vmax.f32 %v502_v36, 0.0 }
  0xac   : > { %v519_v39 = vpack.c.bf16 %v504_v38, %v503_v37 }
  0xae   : > { %v952_v40 = vsel %vm454_vm0, %v519_v39, 0  ;;  %v585_v41 = vunpack.c.l.b16 %v519_v39  ;;  %v586_v42 = vunpack.c.h.b16 %v519_v39 }
  0xaf   : > { %v490_v43 = vpop.f32.mrf.mxu1  ;;  %961 = vmatpush.bf16.msra.mxu1 %v952_v40  ;;  %v1746_v46 = vpop.f32.mrf.mxu0 }
  0xb0   : > { %v587_v44 = vpack.c.b16 %v585_v41, %v585_v41  ;;  %v588_v45 = vpack.c.b16 %v586_v42, %v586_v42  ;;  %v517_v35 = vadd.f32 %v510_v32, %v1746_v46  ;;  %v515_v39 = vpop.permute.xlu1 %514  ;;  %v1033_v40 = vpop.permute.xlu2 %1032 }
  0xb2   : > { %855 = vmatmul.bf16.vlgmr.msra.gmra.mxu2 %v587_v44  ;;  %868 = vmatmul.bf16.vlgmr.msra.gmra.mxu3 %v588_v45 }
  0xb3   : > { %881 = vmatmul.bf16.vlgmr.msrb.gmra.mxu0 %v587_v44  ;;  %894 = vmatmul.bf16.vlgmr.msrb.gmra.mxu1 %v588_v45 }
  0xb7   : > { %v1748_v47 = vpop.f32.mrf.mxu0  ;;  %v492_v48 = vpop.f32.mrf.mxu1 }
  0xb8   : > { %v518_v42 = vadd.f32 %v515_v39, %v1748_v47 }
  0xbf   : > { %v477_v49 = vpop.f32.mrf.mxu0  ;;  %v493_v50 = vpop.f32.mrf.mxu1 }
  0xc2   : > { %907 = vmatmul.bf16.vlgmr.msrb.gmra.mxu2 %v587_v44  ;;  %920 = vmatmul.bf16.vlgmr.msrb.gmra.mxu3 %v588_v45 }
  0xc3   : > { %1366 = vmatmul.msk.bf16.vlgmr.msra.gmra.mxu1 %vm447_vm1, %v927_v51 }
 0x130   : > { %v882_v52 = vpop.f32.mrf.mxu0  ;;  %v895_v53 = vpop.f32.mrf.mxu1 }
 0x131   : > { %v896_v56 = vadd.f32 %v895_v53, %v882_v52 }
 0x135   : > { %v856_v54 = vpop.f32.mrf.mxu2  ;;  %v869_v55 = vpop.f32.mrf.mxu3 }
 0x136   : > { %v870_v57 = vadd.f32 %v869_v55, %v856_v54 }
 0x138   : > { %v925_v58 = vpack.c.bf16 %v896_v56, %v870_v57  ;;  %v884_v59 = vpop.f32.mrf.mxu0  ;;  %v897_v60 = vpop.f32.mrf.mxu1 }
 0x13a   : > { %v969_v61 = vunpack.c.h.b16 %v925_v58  ;;  %v933_v62 = vsel %vm454_vm0, %v925_v58, 0 }
 0x13b   : > { %942 = vmatpush.bf16.msra.mxu0 %v933_v62 }
 0x13c   : > { %v970_v0 = vpack.c.b16 %v969_v61, %v969_v61 }
 0x13d   : > { %v858_v1 = vpop.f32.mrf.mxu2  ;;  %v871_v2 = vpop.f32.mrf.mxu3 }
 0x13e   : > { %1365 = vmatmul.msk.bf16.vlgmr.msra.gmra.mxu0 %vm447_vm1, %v928_v63  ;;  %v975_v3 = vsel %vm454_vm0, %v970_v0, 0 }
 0x13f   : > { %984 = vmatpush.bf16.msrb.mxu0 %v975_v3 }
 0x140   : > { %v963_v13 = vpop.f32.mrf.mxu1 }
 0x145   : > { %v908_v4 = vpop.f32.mrf.mxu2  ;;  %v921_v5 = vpop.f32.mrf.mxu3 }
 0x146   : > { %v922_v6 = vadd.f32 %v921_v5, %v908_v4 }
 0x148   : > { %v926_v7 = vpack.c.bf16 %v922_v6, %v922_v6  ;;  %v965_v14 = vpop.f32.mrf.mxu1 }
 0x14a   : > { %v996_v8 = vsel %vm454_vm0, %v926_v7, 0 }
 0x14b   : > { %1005 = vmatpush.bf16.msrb.mxu1 %v996_v8 }
 0x14d   : > { %v910_v11 = vpop.f32.mrf.mxu2  ;;  %v923_v12 = vpop.f32.mrf.mxu3 }
 0x14e   : > { %1367 = vmatmul.msk.bf16.vlgmr.msrb.gmra.mxu0 %vm447_vm1, %v967_v9  ;;  %1368 = vmatmul.msk.bf16.vlgmr.msrb.gmra.mxu1 %vm447_vm1, %v991_v10 }
 0x1bb   : > { %v944_v16 = vpop.f32.mrf.mxu0 }
 0x1bc   : > { %v964_v19 = vadd.f32 %v963_v13, %v944_v16 }
 0x1c3   : > { %v946_v18 = vpop.f32.mrf.mxu0 }
 0x1cb   : > { %v986_v20 = vpop.f32.mrf.mxu0  ;;  %v1007_v21 = vpop.f32.mrf.mxu1 }
 0x1cc   : > { %v990_v22 = vadd.f32 %v986_v20, %v964_v19 }
 0x1ce   : > { %v1011_v23 = vadd.f32 %v1007_v21, %v990_v22 }
 0x1d0   : > { %v1018_v25 = vadd.f32 %v1016_v24, %v1011_v23 }
 0x1d2   : > { %v1019_v26 = vmax.f32 %v1018_v25, 0.0 }
 0x1d3   : > { %v988_v27 = vpop.f32.mrf.mxu0  ;;  %v1009_v28 = vpop.f32.mrf.mxu1 }
 0x1d4   : > { %v1022_v29 = vpack.c.bf16 %v1019_v26, %v1019_v26 }
 0x1d6   : > { %v1044_v30 = vsel %vm454_vm0, %v1022_v29, 0 }
 0x1d7   : > { %1053 = vmatpush.bf16.msra.mxu2 %v1044_v30 }
 0x1da   : > { %1373 = vmatmul.msk.bf16.vlgmr.msra.gmra.mxu2 %vm447_vm1, %v1429_v31 }
 0x25d   : > { %v1055_v34 = vpop.f32.mrf.mxu2 }
 0x25e   : > { %v1056_v36 = vadd.f32 %v1055_v34, %v1028_v33 }
 0x260   : > { %v1060_v37 = vadd.f32 %v1056_v36, %v517_v35 }
 0x262   : > { %v1062_v38 = vmax.f32 %v1060_v37, 0.0 }
 0x264   : > { %1064 = vst [vmem:[%s423_s20] sm:$0xff] %v1062_v38 }
 0x265   : > { %v1057_v41 = vpop.f32.mrf.mxu2 }
 0x266   : > { %v1058_v43 = vadd.f32 %v1057_v41, %v1033_v40 }
 0x268   : > { %v1061_v44 = vadd.f32 %v1058_v43, %v518_v42 }
 0x26a   : > { %v1063_v45 = vmax.f32 %v1061_v44, 0.0 }
 0x26c   : > { %1065 = vst [vmem:[%s423_s20 + $0x8] sm:$0xff] %v1063_v45 }
 0x26d   : > { %1546 = shalt.err (!%p1543_p8)
}
 0x26e   : > { %s1591_s17 = smov 128   ;;  %s1592_s20 = smov 8  }
 0x26f   : > { %1435 = dma.vmem_to_hbm [thread:$0]  (%p1696_p5), %s1080_s15, 256, %s1082_s16, %s1067_s25, %s1591_s17, %s1591_s17, %s1592_s20  }
 0x270 PF: > { %p1447_p9 = scmp.ge.s32.totalorder %s1585_s24, 2  ;;  %s1096_s29 = sand.u32 1, %s1573_s21  }
 0x271   : > { %s1097_s1 = scalar_lea.sflag [#allocation4], %s1096_s29 }
 0x272   : > { %p1442_p10 = pnand %p1447_p9, %p1700_p6 }
 0x274   : > { %p1443_p11 = pneg %p1442_p10 }
 0x276   : > { %1568 = dma.done.wait (%p1443_p11), %s1097_s1, 256  }
 0x277   : > { %1570 = vsyncadd (%p1443_p11), %s1097_s1, 4294967040  ;;  %p23_p12 = scmp.ge.s32.totalorder %s1683_s27, 4   ;;  %s1835_s21 = smov %s1577_s22 }
 0x278   : > { %s1836_s22 = smov %s1581_s23  ;;  %s1837_s23 = smov %s1694_s30 }
 0x279   : > { %s1838_s24 = smov %s1683_s27  ;;  %25 = sbr.rel (!%p23_p12) target bundleno = 8 (0x8), region = 108 }
 0x27e   :  { %1103 = vsyncpa [#allocation3], 1 }
 0x27f   :  { %1105 = vsyncpa [#allocation3 + $0x1], 1 }
 0x280   :  { %1106 = vsyncpa [#allocation4], 1 }
 0x281   :  { %1108 = vsyncpa [#allocation4 + $0x1], 1 }

</bundles_post_ra>
